<compile_context>
chip_gen: v7x
topology: tpu7x:2x2x1
jax: 0.10.0
libtpu: 0.0.40
codegen_flags: <defaults>
</compile_context>

<pallas_src>
import functools

import jax
import jax.numpy as jnp
from jax.experimental import pallas as pl
from jax.experimental.pallas import tpu as pltpu

_LANE = 128
_VMEM = pl.BlockSpec(memory_space=pltpu.MemorySpace.VMEM)


def _round_up(n, m):
    return ((n + m - 1) // m) * m


# ---------------------------------------------------------------------------
# Shared MLP body:  Linear -> Linear -> ReLU -> Linear  (all f32 MXU dots).
# For large hidden sizes on v6e/v7x, cast x / weights to bf16 here (keep
# preferred_element_type=f32 accumulation); at these shapes it is noise.
# ---------------------------------------------------------------------------
def _mlp_compute(x_ref, w1_ref, b1_ref, w2_ref, b2_ref, w3_ref, b3_ref):
    x = x_ref[...]                                                        # (B, In)  f32
    h1 = jnp.dot(x, w1_ref[...], preferred_element_type=jnp.float32)     # (B, H)
    h1 = h1 + b1_ref[...]
    h2 = jnp.dot(h1, w2_ref[...], preferred_element_type=jnp.float32)    # (B, H2p)
    h2 = jnp.maximum(h2 + b2_ref[...], 0.0)                              # ReLU
    logits = jnp.dot(h2, w3_ref[...], preferred_element_type=jnp.float32)  # (B, Op)
    return logits + b3_ref[...]


# ---------------------------------------------------------------------------
# Kernel 1: logits only (no labels)
# ---------------------------------------------------------------------------
def mlp_kernel(x_ref, w1_ref, b1_ref, w2_ref, b2_ref, w3_ref, b3_ref, out_ref):
    logits = _mlp_compute(x_ref, w1_ref, b1_ref, w2_ref, b2_ref, w3_ref, b3_ref)
    out_ref[...] = logits.astype(out_ref.dtype)          # lane-dense (B, Op) store


# ---------------------------------------------------------------------------
# Kernel 2: fused logits + softmax cross-entropy (mean over true batch rows)
# ---------------------------------------------------------------------------
def mlp_ce_kernel(x_ref, w1_ref, b1_ref, w2_ref, b2_ref, w3_ref, b3_ref,
                  labels_ref, out_ref, loss_ref, *, n_classes, n_rows):
    logits = _mlp_compute(x_ref, w1_ref, b1_ref, w2_ref, b2_ref, w3_ref, b3_ref)
    out_ref[...] = logits.astype(out_ref.dtype)          # lane-dense (B, Op) store

    # ---- cross-entropy epilogue (padded classes masked out) ----
    b, c_pad = logits.shape
    cls = jax.lax.broadcasted_iota(jnp.int32, (b, c_pad), 1)        # (B, Cp)
    valid = cls < n_classes
    masked = jnp.where(valid, logits, -jnp.inf)                     # kill padded lanes
    m = jnp.max(masked, axis=-1, keepdims=True)                     # (B, 1)
    e = jnp.exp(masked - m)                                         # exp once (EUP)
    lse = jnp.log(jnp.sum(e, axis=-1, keepdims=True)) + m           # (B, 1)
    onehot = (cls == labels_ref[...]).astype(jnp.float32)           # labels < n_classes
    picked = jnp.sum(logits * onehot, axis=-1, keepdims=True)       # (B, 1)
    per_row = lse - picked                                          # (B, 1)
    # mean over the TRUE batch size (n_rows), not any padded row count
    loss_ref[...] = jnp.sum(per_row, keepdims=True) * (1.0 / n_rows)  # (1, 1)


# ---------------------------------------------------------------------------
# Wrapper
# ---------------------------------------------------------------------------
class NetworkPallas:
    """Pallas TPU port of the PyTorch `network` module."""

    def __init__(self, input_size, hidden_size, output_size, key):
        self.input_size = input_size
        self.hidden_size = hidden_size
        self.output_size = output_size

        h2 = hidden_size // 2
        self._h2_pad = _round_up(h2, _LANE)     # lane-dense intermediate
        self._out_pad = _round_up(output_size, _LANE)  # lane-dense logits

        ks = jax.random.split(key, 6)

        def _init_linear(kw, kb, fan_in, fan_out):
            # PyTorch nn.Linear default init: U(-1/sqrt(fan_in), 1/sqrt(fan_in))
            bound = 1.0 / jnp.sqrt(jnp.float32(fan_in))
            w = jax.random.uniform(kw, (fan_in, fan_out), jnp.float32, -bound, bound)
            b = jax.random.uniform(kb, (1, fan_out), jnp.float32, -bound, bound)
            return w, b

        w1, b1 = _init_linear(ks[0], ks[1], input_size, hidden_size)
        w2, b2 = _init_linear(ks[2], ks[3], hidden_size, h2)
        w3, b3 = _init_linear(ks[4], ks[5], h2, output_size)

        # Zero-pad feature dims to 128 lanes (done once, at init time).
        w2 = jnp.pad(w2, ((0, 0), (0, self._h2_pad - h2)))
        b2 = jnp.pad(b2, ((0, 0), (0, self._h2_pad - h2)))
        w3 = jnp.pad(w3, ((0, self._h2_pad - h2), (0, self._out_pad - output_size)))
        b3 = jnp.pad(b3, ((0, 0), (0, self._out_pad - output_size)))

        self.params = (w1, b1, w2, b2, w3, b3)

    def __call__(self, inputs=None, labels=None):
        batch = inputs.shape[0]

        if labels is None:
            out = pl.pallas_call(
                mlp_kernel,
                out_shape=jax.ShapeDtypeStruct((batch, self._out_pad), jnp.float32),
                in_specs=[_VMEM] * 7,
                out_specs=_VMEM,
            )(inputs, *self.params)
            return out[:, : self.output_size]

        labels2d = labels.astype(jnp.int32).reshape(-1, 1)
        kernel = functools.partial(
            mlp_ce_kernel, n_classes=self.output_size, n_rows=batch
        )
        out, loss = pl.pallas_call(
            kernel,
            out_shape=(
                jax.ShapeDtypeStruct((batch, self._out_pad), jnp.float32),
                jax.ShapeDtypeStruct((1, 1), jnp.float32),
            ),
            in_specs=[_VMEM] * 8,
            out_specs=(_VMEM, _VMEM),
        )(inputs, *self.params, labels2d)
        return out[:, : self.output_size], loss[0, 0]


# ---------------------------------------------------------------------------
# Pure-JAX reference (for correctness check only)
# ---------------------------------------------------------------------------
def _ref_forward(x, params, out_size):
    w1, b1, w2, b2, w3, b3 = params
    hp = jax.lax.Precision.HIGHEST
    h1 = jnp.dot(x, w1, precision=hp) + b1
    h2 = jnp.maximum(jnp.dot(h1, w2, precision=hp) + b2, 0.0)
    logits = jnp.dot(h2, w3, precision=hp) + b3
    return logits[:, :out_size]


def _ref_loss(logits, labels):
    logp = jax.nn.log_softmax(logits, axis=-1)
    return -jnp.mean(logp[jnp.arange(logits.shape[0]), labels])


if __name__ == "__main__":
    key = jax.random.PRNGKey(0)
    k_param, k_x, k_lbl = jax.random.split(key, 3)

    batch = 8
    input_size = 32
    hidden_size = 32      # hidden // 2 = 16 -> padded to 128 internally
    output_size = 10      # -> padded to 128 internally, sliced back outside

    net = NetworkPallas(input_size, hidden_size, output_size, k_param)

    x = jax.random.normal(k_x, (batch, input_size), jnp.float32)
    labels = jax.random.randint(k_lbl, (batch,), 0, output_size, jnp.int32)

    # path without labels
    logits = net(inputs=x)
    logits = jax.block_until_ready(logits)

    # path with labels (returns (logits, loss)) -- single fused pallas_call
    logits2, loss = net(inputs=x, labels=labels)
    logits2 = jax.block_until_ready(logits2)
    loss = jax.block_until_ready(loss)

    assert logits.shape == (batch, output_size)
    assert logits2.shape == (batch, output_size)
    assert loss.shape == ()

    # correctness vs. pure-JAX reference
    ref_logits = _ref_forward(x, net.params, output_size)
    ref_loss = _ref_loss(ref_logits, labels)
    assert jnp.allclose(logits, ref_logits, atol=1e-3, rtol=1e-3)
    assert jnp.allclose(logits2, ref_logits, atol=1e-3, rtol=1e-3)
    assert jnp.allclose(loss, ref_loss, atol=1e-3, rtol=1e-3)

    print("KERNEL_OK")
</pallas_src>

<mosaic_0001>
module attributes {stable_mosaic.version = 11 : i64} {
  func.func @mlp_kernel(%arg0: memref<8x32xf32, #tpu.memory_space<vmem>>, %arg1: memref<32x32xf32, #tpu.memory_space<vmem>>, %arg2: memref<1x32xf32, #tpu.memory_space<vmem>>, %arg3: memref<32x128xf32, #tpu.memory_space<vmem>>, %arg4: memref<1x128xf32, #tpu.memory_space<vmem>>, %arg5: memref<128x128xf32, #tpu.memory_space<vmem>>, %arg6: memref<1x128xf32, #tpu.memory_space<vmem>>, %arg7: memref<8x128xf32, #tpu.memory_space<vmem>>) attributes {dimension_semantics = [], scalar_prefetch = 0 : i64, scratch_operands = 0 : i64, tpu.core_type = #tpu.core_type<tc>} {
    %c0 = arith.constant 0 : index
    %c0_0 = arith.constant 0 : index
    %0 = vector.load %arg0[%c0, %c0_0] : memref<8x32xf32, #tpu.memory_space<vmem>>, vector<8x32xf32>
    %c0_1 = arith.constant 0 : index
    %c0_2 = arith.constant 0 : index
    %1 = vector.load %arg1[%c0_1, %c0_2] : memref<32x32xf32, #tpu.memory_space<vmem>>, vector<32x32xf32>
    %cst = arith.constant dense<0.000000e+00> : vector<8x32xf32>
    %2 = tpu.matmul %0, %1, %cst {dimension_numbers = #tpu.dot_dimension_numbers<[1], [0], [0], [1], [0, 0, 1, 1], [], []>} : vector<8x32xf32>, vector<32x32xf32>, vector<8x32xf32> -> vector<8x32xf32>
    %c0_3 = arith.constant 0 : index
    %c0_4 = arith.constant 0 : index
    %3 = vector.load %arg2[%c0_3, %c0_4] : memref<1x32xf32, #tpu.memory_space<vmem>>, vector<1x32xf32>
    %4 = vector.broadcast %3 : vector<1x32xf32> to vector<8x32xf32>
    %5 = arith.addf %2, %4 : vector<8x32xf32>
    %c0_5 = arith.constant 0 : index
    %c0_6 = arith.constant 0 : index
    %6 = vector.load %arg3[%c0_5, %c0_6] : memref<32x128xf32, #tpu.memory_space<vmem>>, vector<32x128xf32>
    %cst_7 = arith.constant dense<0.000000e+00> : vector<8x128xf32>
    %7 = tpu.matmul %5, %6, %cst_7 {dimension_numbers = #tpu.dot_dimension_numbers<[1], [0], [0], [1], [0, 0, 1, 1], [], []>} : vector<8x32xf32>, vector<32x128xf32>, vector<8x128xf32> -> vector<8x128xf32>
    %c0_8 = arith.constant 0 : index
    %c0_9 = arith.constant 0 : index
    %8 = vector.load %arg4[%c0_8, %c0_9] : memref<1x128xf32, #tpu.memory_space<vmem>>, vector<1x128xf32>
    %9 = vector.broadcast %8 : vector<1x128xf32> to vector<8x128xf32>
    %10 = arith.addf %7, %9 : vector<8x128xf32>
    %cst_10 = arith.constant 0.000000e+00 : f32
    %11 = vector.broadcast %cst_10 : f32 to vector<8x128xf32>
    %12 = arith.maximumf %10, %11 : vector<8x128xf32>
    %c0_11 = arith.constant 0 : index
    %c0_12 = arith.constant 0 : index
    %13 = vector.load %arg5[%c0_11, %c0_12] : memref<128x128xf32, #tpu.memory_space<vmem>>, vector<128x128xf32>
    %cst_13 = arith.constant dense<0.000000e+00> : vector<8x128xf32>
    %14 = tpu.matmul %12, %13, %cst_13 {dimension_numbers = #tpu.dot_dimension_numbers<[1], [0], [0], [1], [0, 0, 1, 1], [], []>} : vector<8x128xf32>, vector<128x128xf32>, vector<8x128xf32> -> vector<8x128xf32>
    %c0_14 = arith.constant 0 : index
    %c0_15 = arith.constant 0 : index
    %15 = vector.load %arg6[%c0_14, %c0_15] : memref<1x128xf32, #tpu.memory_space<vmem>>, vector<1x128xf32>
    %16 = vector.broadcast %15 : vector<1x128xf32> to vector<8x128xf32>
    %17 = arith.addf %14, %16 : vector<8x128xf32>
    %c0_16 = arith.constant 0 : index
    %c0_17 = arith.constant 0 : index
    %18 = vector.load %arg7[%c0_16, %c0_17] : memref<8x128xf32, #tpu.memory_space<vmem>>, vector<8x128xf32>
    tpu.vector_store %arg7[%c0_16, %c0_17], %17 {strides = array<i32>} : memref<8x128xf32, #tpu.memory_space<vmem>>, vector<8x128xf32>,
    return
  }
}

</mosaic_0001>

<bundles_post_ra>
// kernel: tpu_custom_call.1
= control target key start
LH: loop header
LB: loop body
LE: loop exit
PB: predicated region body
PF: predicated region fallthrough
CT: control target
= control target key end

     0   :  { %12 = vsyncpa [#allocation3], 0  ;;  %s760_s0 = inlined_call_operand.hbm [shape: f32[8,32], index: 0, kind: input, shape index: {}]   ;;  %s761_s1 = inlined_call_operand.hbm [shape: f32[32,32], index: 1, kind: input, shape index: {}]   ;;  %s762_s2 = inlined_call_operand.vmem [shape: f32[1,32], index: 2, kind: input, shape index: {}]   ;;  %s763_s3 = inlined_call_operand.hbm [shape: f32[32,128], index: 3, kind: input, shape index: {}]   ;;  %s764_s4 = inlined_call_operand.vmem [shape: f32[1,128], index: 4, kind: input, shape index: {}]   ;;  %s765_s5 = inlined_call_operand.hbm [shape: f32[128,128], index: 5, kind: input, shape index: {}]   ;;  %s766_s6 = inlined_call_operand.vmem [shape: f32[1,128], index: 6, kind: input, shape index: {}]   ;;  %s767_s7 = inlined_call_operand.hbm [shape: f32[8,128], index: 7, kind: output, shape index: {}]  }
   0x1   :  { %13 = vsyncpa [#allocation6], 0 }
   0x2   :  { %14 = vsyncpa [#allocation9], 0 }
   0x3   :  { %15 = vsyncpa [#allocation4], 0  ;;  %s615_s24 = smov [#allocation5]   ;;  %s497_s28 = scalar_lea.hbm %s761_s1, 512 }
   0x4   :  { %s31_s25 = sshll.u32 %s615_s24, 4  ;;  %p498_p0 = scmp.ne.s32.totalorder %s761_s1, %s497_s28  ;;  %s32_s25 = int_to_ptr.vmem [resolvable:$true] %s31_s25 }
   0x5   :  { %p501_p1 = scmp.lt.u32.totalorder %s497_s28, %s761_s1 }
   0x7   :  { %p503_p2 = pnand %p501_p1, %p498_p0 }
   0x9   :  { %506 = shalt.err (!%p503_p2)
}
   0xa   :  { %s507_s10 = scalar_lea.vmem %s32_s25, 512  ;;  %p512_p4 = scmp.lt.s32.totalorder %s32_s25, %s32_s25 }
   0xb   :  { %p508_p3 = scmp.ne.s32.totalorder %s32_s25, %s507_s10  ;;  %p513_p5 = scmp.lt.s32.totalorder %s507_s10, %s507_s10 }
   0xd   :  { %p514_p6 = por %p513_p5, %p512_p4 }
   0xf   :  { %p515_p7 = pnand %p514_p6, %p508_p3 }
  0x11   :  { %518 = shalt.err (!%p515_p7)
}
  0x12   :  { %s616_s11 = smov 128   ;;  %s617_s12 = smov 8  }
  0x13   :  { %37 = dma.hbm_to_vmem [thread:$0]  %s761_s1, 512, %s32_s25, [#allocation6], %s616_s11, %s616_s11, %s617_s12  }
  0x14   :  { %s618_s15 = smov [#allocation2]   ;;  %s619_s17 = smov [#allocation7]  }
  0x15   :  { %s22_s16 = sshll.u32 %s618_s15, 4  ;;  %s45_s18 = sshll.u32 %s619_s17, 4  ;;  %s23_s16 = int_to_ptr.vmem [resolvable:$true] %s22_s16  ;;  %s46_s18 = int_to_ptr.vmem [resolvable:$true] %s45_s18 }
  0x16   :  { %s519_s21 = scalar_lea.hbm %s760_s0, 128 }
  0x17   :  { %p520_p8 = scmp.ne.s32.totalorder %s760_s0, %s519_s21  ;;  %p523_p9 = scmp.lt.u32.totalorder %s519_s21, %s760_s0 }
  0x19   :  { %p525_p10 = pnand %p523_p9, %p520_p8 }
  0x1b   :  { %528 = shalt.err (!%p525_p10)
}
  0x1c   :  { %s529_s1 = scalar_lea.vmem %s23_s16, 128  ;;  %p534_p12 = scmp.lt.s32.totalorder %s23_s16, %s23_s16 }
  0x1d   :  { %p530_p11 = scmp.ne.s32.totalorder %s23_s16, %s529_s1  ;;  %p535_p13 = scmp.lt.s32.totalorder %s529_s1, %s529_s1 }
  0x1f   :  { %p536_p0 = por %p535_p13, %p534_p12 }
  0x21   :  { %p537_p1 = pnand %p536_p0, %p530_p11 }
  0x23   :  { %540 = shalt.err (!%p537_p1)
}
  0x24   :  { %25 = dma.hbm_to_vmem [thread:$0]  %s760_s0, 128, %s23_s16, [#allocation3]  }
  0x25   :  { %s541_s30 = scalar_lea.hbm %s763_s3, 512 }
  0x26   :  { %p542_p2 = scmp.ne.s32.totalorder %s763_s3, %s541_s30  ;;  %p545_p3 = scmp.lt.u32.totalorder %s541_s30, %s763_s3 }
  0x28   :  { %p547_p4 = pnand %p545_p3, %p542_p2 }
  0x2a   :  { %550 = shalt.err (!%p547_p4)
}
  0x2b   :  { %s551_s14 = scalar_lea.vmem %s46_s18, 512  ;;  %p556_p6 = scmp.lt.s32.totalorder %s46_s18, %s46_s18 }
  0x2c   :  { %p552_p5 = scmp.ne.s32.totalorder %s46_s18, %s551_s14  ;;  %p557_p7 = scmp.lt.s32.totalorder %s551_s14, %s551_s14 }
  0x2e   :  { %p558_p8 = por %p557_p7, %p556_p6 }
  0x30   :  { %p559_p9 = pnand %p558_p8, %p552_p5 }
  0x32   :  { %562 = shalt.err (!%p559_p9)
}
  0x33   :  { %51 = dma.hbm_to_vmem [thread:$0]  %s763_s3, 512, %s46_s18, [#allocation6], %s616_s11, %s616_s11, %s617_s12  }
  0x34   :  { %s620_s16 = smov [#allocation8]   ;;  %s563_s21 = scalar_lea.hbm %s765_s5, 2048 }
  0x35   :  { %s59_s17 = sshll.u32 %s620_s16, 4  ;;  %p564_p10 = scmp.ne.s32.totalorder %s765_s5, %s563_s21  ;;  %s60_s17 = int_to_ptr.vmem [resolvable:$true] %s59_s17 }
  0x36   :  { %p567_p11 = scmp.lt.u32.totalorder %s563_s21, %s765_s5 }
  0x38   :  { %p569_p12 = pnand %p567_p11, %p564_p10 }
  0x3a   :  { %572 = shalt.err (!%p569_p12)
}
  0x3b   :  { %s573_s1 = scalar_lea.vmem %s60_s17, 2048  ;;  %p578_p0 = scmp.lt.s32.totalorder %s60_s17, %s60_s17 }
  0x3c   :  { %p574_p13 = scmp.ne.s32.totalorder %s60_s17, %s573_s1  ;;  %p579_p1 = scmp.lt.s32.totalorder %s573_s1, %s573_s1 }
  0x3e   :  { %p580_p2 = por %p579_p1, %p578_p0 }
  0x40   :  { %p581_p3 = pnand %p580_p2, %p574_p13 }
  0x42   :  { %584 = shalt.err (!%p581_p3)
}
  0x43   :  { %65 = dma.hbm_to_vmem [thread:$0]  %s765_s5, 2048, %s60_s17, [#allocation9], %s616_s11, %s616_s11, %s617_s12  }
  0x44   :  { %607 = dma.done.wait [#allocation3], 128  }
  0x45   :  { %608 = vsyncadd [#allocation3], 4294967168 }
  0x46   :  { %609 = dma.done.wait [#allocation6], 1024  }
  0x47   :  { %610 = vsyncadd [#allocation6], 4294966272 }
  0x48   :  { %611 = dma.done.wait [#allocation9], 2048  }
  0x49   :  { %612 = vsyncadd [#allocation9], 4294965248  ;;  %v621_v0 = vmov 0.0|0.0   ;;  %vm622_vm0 = vmmov 0   ;;  %v623_v1 = vmov 0.0   ;;  %v81_v2 = vld [vmem:[#allocation5] sm:$0xff] }
  0x4a   :  { %451 = vmatprep.subr.bf16.mxu1 %v621_v0  ;;  %402 = vmatprep.mubr.msk.f32.mxu1 %vm622_vm0, %v623_v1  ;;  %v82_v3 = vld [vmem:[#allocation5 + $0x8] sm:$0xff]  ;;  %v83_v4 = vld [vmem:[#allocation5 + $0x10] sm:$0xff]  ;;  %v84_v6 = vld [vmem:[#allocation5 + $0x18] sm:$0xff]  ;;  %vm92_vm1 = vcmask 261120   ;;  %s624_s28 = smov [#allocation10]  }
  0x4b   :  { %463 = vmatprep.subr.bf16.mxu0 %v621_v0  ;;  %448 = vmatprep.mubr.msk.f32.mxu0 %vm622_vm0, %v623_v1  ;;  %v452_v5 = vpack.c.bf16 %v82_v3, %v81_v2  ;;  %v455_v7 = vpack.c.bf16 %v84_v6, %v83_v4  ;;  %v166_v8 = vld [vmem:[#allocation7] sm:$0xff]  ;;  %v167_v9 = vld [vmem:[#allocation7 + $0x8] sm:$0xff]  ;;  %v80_v10 = vld [vmem:[#allocation2] sm:$0xff]  ;;  %s351_s29 = sshll.u32 %s624_s28, 4  ;;  %s352_s29 = int_to_ptr.vmem [resolvable:$true] %s351_s29 }
  0x4c   :  { %v458_v11 = vpack.c.bf16 %v167_v9, %v166_v8  ;;  %v168_v12 = vld [vmem:[#allocation7 + $0x10] sm:$0xff]  ;;  %v169_v13 = vld [vmem:[#allocation7 + $0x18] sm:$0xff]  ;;  %v251_v15 = vld [vmem:[#allocation8] sm:$0xff]  ;;  %s585_s30 = scalar_lea.vmem %s352_s29, 128  ;;  %p590_p5 = scmp.lt.s32.totalorder %s352_s29, %s352_s29 }
  0x4d   :  { %453 = vmatpush3.bf16.msra.mxu1 %v452_v5  ;;  %v461_v14 = vpack.c.bf16 %v169_v13, %v168_v12  ;;  %v252_v16 = vld [vmem:[#allocation8 + $0x8] sm:$0xff]  ;;  %v253_v17 = vld [vmem:[#allocation8 + $0x10] sm:$0xff]  ;;  %v254_v19 = vld [vmem:[#allocation8 + $0x18] sm:$0xff]  ;;  %p586_p4 = scmp.ne.s32.totalorder %s352_s29, %s585_s30  ;;  %p591_p6 = scmp.lt.s32.totalorder %s585_s30, %s585_s30 }
  0x4e   :  { %454 = vmatprep.subr.bf16.mxu1 %v621_v0  ;;  %v464_v18 = vpack.c.bf16 %v252_v16, %v251_v15  ;;  %v467_v20 = vpack.c.bf16 %v254_v19, %v253_v17  ;;  %v255_v21 = vld [vmem:[#allocation8 + $0x20] sm:$0xff]  ;;  %v256_v22 = vld [vmem:[#allocation8 + $0x28] sm:$0xff]  ;;  %v257_v24 = vld [vmem:[#allocation8 + $0x30] sm:$0xff] }
  0x4f   :  { %v470_v23 = vpack.c.bf16 %v256_v22, %v255_v21  ;;  %v258_v25 = vld [vmem:[#allocation8 + $0x38] sm:$0xff]  ;;  %v259_v27 = vld [vmem:[#allocation8 + $0x40] sm:$0xff]  ;;  %v260_v28 = vld [vmem:[#allocation8 + $0x48] sm:$0xff]  ;;  %p592_p7 = por %p591_p6, %p590_p5 }
  0x50   :  { %465 = vmatpush3.bf16.msra.mxu0 %v464_v18  ;;  %v473_v26 = vpack.c.bf16 %v258_v25, %v257_v24  ;;  %v476_v29 = vpack.c.bf16 %v260_v28, %v259_v27  ;;  %v261_v30 = vld [vmem:[#allocation8 + $0x50] sm:$0xff]  ;;  %v262_v31 = vld [vmem:[#allocation8 + $0x58] sm:$0xff]  ;;  %v263_v33 = vld [vmem:[#allocation8 + $0x60] sm:$0xff] }
  0x51   :  { %456 = vmatpush3.bf16.msra.mxu1 %v455_v7  ;;  %466 = vmatprep.subr.bf16.mxu0 %v621_v0  ;;  %v479_v32 = vpack.c.bf16 %v262_v31, %v261_v30  ;;  %v264_v34 = vld [vmem:[#allocation8 + $0x68] sm:$0xff]  ;;  %v362_v36 = vld [vmem:[%s762_s2] ss:$0 sm:$0xff]  ;;  %v265_v40 = vld [vmem:[#allocation8 + $0x70] sm:$0xff]  ;;  %p593_p8 = pnand %p592_p7, %p586_p4 }
  0x52   :  { %457 = vmatprep.subr.bf16.mxu1 %v621_v0  ;;  %v482_v35 = vpack.c.bf16 %v264_v34, %v263_v33  ;;  %v266_v41 = vld [vmem:[#allocation8 + $0x78] sm:$0xff] }
  0x53   :  { %v485_v42 = vpack.c.bf16 %v266_v41, %v265_v40  ;;  %v364_v43 = vld [vmem:[%s764_s4] ss:$0 sm:$0xff] }
  0x54   :  { %403 = vmatmul.mubr.msk.f32.vlgmr.msra.gmra.mrb[0].mxu1 %vm92_vm1, %v80_v10  ;;  %468 = vmatpush3.bf16.msra.mxu0 %v467_v20  ;;  %v366_v48 = vld [vmem:[%s766_s6] ss:$0 sm:$0xff] }
  0x55   :  { %459 = vmatpush3.bf16.msra.mxu1 %v458_v11  ;;  %413 = vmatprep.mubr.msk.f32.mxu1 %vm622_vm0, %v623_v1 }
  0x56   :  { %460 = vmatprep.subr.bf16.mxu1 %v621_v0  ;;  %469 = vmatprep.subr.bf16.mxu0 %v621_v0 }
  0x58   :  { %471 = vmatpush3.bf16.msra.mxu0 %v470_v23 }
  0x59   :  { %462 = vmatpush3.bf16.msra.mxu1 %v461_v14  ;;  %472 = vmatprep.subr.bf16.mxu0 %v621_v0 }
  0x5c   :  { %474 = vmatpush3.bf16.msra.mxu0 %v473_v26 }
  0x5d   :  { %475 = vmatprep.subr.bf16.mxu0 %v621_v0 }
  0x60   :  { %477 = vmatpush3.bf16.msra.mxu0 %v476_v29 }
  0x61   :  { %478 = vmatprep.subr.bf16.mxu0 %v621_v0 }
  0x64   :  { %480 = vmatpush3.bf16.msra.mxu0 %v479_v32 }
  0x65   :  { %481 = vmatprep.subr.bf16.mxu0 %v621_v0 }
  0x68   :  { %483 = vmatpush3.bf16.msra.mxu0 %v482_v35 }
  0x69   :  { %484 = vmatprep.subr.bf16.mxu0 %v621_v0 }
  0x6c   :  { %486 = vmatpush3.bf16.msra.mxu0 %v485_v42 }
 0x127   :  { %v162_v37 = vpop.f32.mrb[0].mxu1 }
 0x128   :  { %v163_v38 = vadd.f32 %v362_v36, %v162_v37  ;;  %v404_v39 = vpop.f32.mrb[1].mxu1 }
 0x12a   :  { %414 = vmatmul.mubr.msk.f32.vlgmr.msra.gmra.mrb[2].mxu1 %vm92_vm1, %v163_v38 }
 0x1fd   :  { %v246_v44 = vpop.f32.mrb[2].mxu1 }
 0x1fe   :  { %v247_v45 = vadd.f32 %v364_v43, %v246_v44  ;;  %v415_v46 = vpop.f32.mrb[3].mxu1 }
 0x200   :  { %v250_v47 = vmax.f32 %v247_v45, 0.0 }
 0x202   :  { %449 = vmatmul.mubr.f32.vlgmr.msra.gmra.mrb[0].mxu0 %v250_v47 }
 0x2d5   :  { %v340_v49 = vpop.f32.mrb[0].mxu0 }
 0x2d6   :  { %v341_v50 = vadd.f32 %v366_v48, %v340_v49  ;;  %v450_v51 = vpop.f32.mrb[1].mxu0 }
 0x2d8   :  { %344 = vst [vmem:[#allocation10] sm:$0xff] %v341_v50 }
 0x2d9   :  { %596 = shalt.err (!%p593_p8)
}
 0x2da   :  { %s597_s9 = scalar_lea.hbm %s767_s7, 128 }
 0x2db   :  { %p598_p9 = scmp.ne.s32.totalorder %s767_s7, %s597_s9  ;;  %p601_p10 = scmp.lt.u32.totalorder %s597_s9, %s767_s7 }
 0x2dd   :  { %p603_p11 = pnand %p601_p10, %p598_p9 }
 0x2df   :  { %606 = shalt.err (!%p603_p11)
}
 0x2e0   :  { %354 = dma.vmem_to_hbm [thread:$0]  %s352_s29, 128, %s767_s7, [#allocation4]  }
 0x2e1   :  { %613 = dma.done.wait [#allocation4], 128  }
 0x2e2   :  { %614 = vsyncadd [#allocation4], 4294967168 }
 0x2e3   :  { %358 = vsyncpa [#allocation3], 1 }
 0x2e4   :  { %359 = vsyncpa [#allocation6], 1 }
 0x2e5   :  { %360 = vsyncpa [#allocation9], 1 }
 0x2e6   :  { %361 = vsyncpa [#allocation4], 1 }

</bundles_post_ra>
